<compile_context>
chip_gen: v7x
topology: tpu7x:2x2x1
jax: 0.10.0
libtpu: 0.0.40
codegen_flags: <defaults>
</compile_context>

<pallas_src>
import math

import jax
import jax.numpy as jnp
from jax.experimental import pallas as pl
from jax.experimental.pallas import tpu as pltpu


def _pick_channel_tile(c, max_tile=512):
    """Largest divisor of c that is a multiple of 8 and <= max_tile (else c)."""
    if c <= max_tile:
        return c
    for t in range(max_tile, 7, -1):
        if c % t == 0 and t % 8 == 0:
            return t
    return c


def aux_head_kernel(x1_ref, x2_ref, x3_ref, x4_ref, w1t_ref, w2t_ref, b_ref,
                    o_ref, acc_ref):
    """Fused (pool -> 1x1 conv -> fc) head.

    x{1..4}_ref : [TN, TK, HW]   per-feature-map tiles (NCHW, spatial flattened)
    w1t_ref     : [4, TK, C_out] conv1x1 weight, transposed & split per input
    w2t_ref     : [C_out, K]     fc weight, pre-transposed
    b_ref       : [1, K]         fc bias
    o_ref       : [TN, K]        logits
    acc_ref     : [TN, C_out]    f32 accumulator (VMEM scratch)
    """
    k = pl.program_id(1)
    nk = pl.num_programs(1)

    @pl.when(k == 0)
    def _init():
        acc_ref[...] = jnp.zeros_like(acc_ref)

    # Global-average-pool first (lane reduction), then the 1x1 conv as a small
    # batched MXU matmul per feature map, accumulated over channel tiles.
    update = jnp.zeros(acc_ref.shape, jnp.float32)
    for i, x_ref in enumerate((x1_ref, x2_ref, x3_ref, x4_ref)):
        pooled = jnp.sum(x_ref[...].astype(jnp.float32), axis=-1)      # [TN, TK]
        update = update + jnp.dot(pooled, w1t_ref[i],
                                  preferred_element_type=jnp.float32)  # [TN, C_out]
    acc_ref[...] += update

    @pl.when(k == nk - 1)
    def _finalize():
        inv_hw = 1.0 / x1_ref.shape[-1]
        pooled_conv = acc_ref[...] * inv_hw                             # mean, not sum
        logits = jnp.dot(pooled_conv, w2t_ref[...],
                         preferred_element_type=jnp.float32) + b_ref[...]
        o_ref[...] = logits.astype(o_ref.dtype)


def aux_classifier_forward(x_list, w1, w2, b):
    """JAX/Pallas equivalent of ResNet_Final_Auxiliary_Classifer.forward.

    x_list: list of 4 NCHW arrays [N, C, H, W]
    w1    : [C_out, 4*C]   conv1x1 weight (1x1 kernel dims squeezed)
    w2    : [num_classes, C_out]
    b     : [num_classes]
    returns [N, num_classes]
    """
    assert len(x_list) == 4
    N, C, H, W = x_list[0].shape
    HW = H * W
    x_flat = [x.reshape(N, C, HW) for x in x_list]

    C_out, C_cat = w1.shape
    assert C_cat == 4 * C
    K = w2.shape[0]

    # Weight plumbing (no feature-map concat: split w1 per input instead).
    w1t = jnp.transpose(w1).reshape(4, C, C_out)   # [4, C, C_out]
    w2t = jnp.transpose(w2)                        # [C_out, K]
    b2 = b.reshape(1, K)

    TN = N                                         # aux-head batches are small
    TK = _pick_channel_tile(C)
    grid = (pl.cdiv(N, TN), C // TK)

    x_spec = pl.BlockSpec((TN, TK, HW), lambda n, k: (n, k, 0))

    return pl.pallas_call(
        aux_head_kernel,
        out_shape=jax.ShapeDtypeStruct((N, K), x_list[0].dtype),
        grid_spec=pltpu.PrefetchScalarGridSpec(
            num_scalar_prefetch=0,
            grid=grid,
            in_specs=[
                x_spec, x_spec, x_spec, x_spec,
                pl.BlockSpec((4, TK, C_out), lambda n, k: (0, k, 0)),
                pl.BlockSpec((C_out, K), lambda n, k: (0, 0)),
                pl.BlockSpec((1, K), lambda n, k: (0, 0)),
            ],
            out_specs=pl.BlockSpec((TN, K), lambda n, k: (n, 0)),
            scratch_shapes=[pltpu.VMEM((TN, C_out), jnp.float32)],
        ),
        compiler_params=pltpu.CompilerParams(
            dimension_semantics=("parallel", "arbitrary"),
            vmem_limit_bytes=64 * 1024 * 1024,
        ),
    )(*x_flat, w1t, w2t, b2)


if __name__ == "__main__":
    # Small, shape-consistent analog of the module: C plays the role of
    # 512 * block.expansion; forward takes a list of 4 feature maps with C
    # channels each (concatenated to 4*C inside the module).
    N, C, H, W = 2, 32, 8, 8
    num_classes = 10
    C_cat = 4 * C

    key = jax.random.PRNGKey(0)
    kw1, kw2, kb, kx = jax.random.split(key, 4)

    x_list = [
        jax.random.normal(k, (N, C, H, W), dtype=jnp.float32)
        for k in jax.random.split(kx, 4)
    ]
    w1 = jax.random.normal(kw1, (C, C_cat), jnp.float32) * (1.0 / math.sqrt(C_cat))
    w2 = jax.random.normal(kw2, (num_classes, C), jnp.float32) * (1.0 / math.sqrt(C))
    b = jax.random.normal(kb, (num_classes,), jnp.float32) * 0.01

    out = jax.block_until_ready(aux_classifier_forward(x_list, w1, w2, b))

    # Pure-JAX reference of the PyTorch forward for validation.
    xc = jnp.concatenate(x_list, axis=1)                       # cat(dim=1)
    conv = jnp.einsum("oc,nchw->nohw", w1, xc)                 # conv1x1, no bias
    pooled = conv.mean(axis=(2, 3))                            # AdaptiveAvgPool2d((1,1)) + view
    ref = pooled @ w2.T + b                                    # fc

    assert out.shape == (N, num_classes), out.shape
    assert jnp.allclose(out, ref, atol=1e-3, rtol=1e-3), float(jnp.abs(out - ref).max())
    print("KERNEL_OK")
</pallas_src>

<mosaic_0001>
module attributes {stable_mosaic.version = 11 : i64} {
  func.func @aux_head_kernel(%arg0: i32, %arg1: i32, %arg2: memref<2x32x64xf32, #tpu.memory_space<vmem>>, %arg3: memref<2x32x64xf32, #tpu.memory_space<vmem>>, %arg4: memref<2x32x64xf32, #tpu.memory_space<vmem>>, %arg5: memref<2x32x64xf32, #tpu.memory_space<vmem>>, %arg6: memref<4x32x32xf32, #tpu.memory_space<vmem>>, %arg7: memref<32x10xf32, #tpu.memory_space<vmem>>, %arg8: memref<1x10xf32, #tpu.memory_space<vmem>>, %arg9: memref<2x10xf32, #tpu.memory_space<vmem>>, %arg10: memref<2x32xf32, #tpu.memory_space<vmem>>) attributes {dimension_semantics = [#tpu.dimension_semantics<parallel>, #tpu.dimension_semantics<arbitrary>], iteration_bounds = array<i64: 1, 1>, scalar_prefetch = 0 : i64, scratch_operands = 1 : i64, tpu.core_type = #tpu.core_type<tc>, window_params = [{transform_indices = @transform_0, window_bounds = array<i64: 2, 32, 64>}, {transform_indices = @transform_1, window_bounds = array<i64: 2, 32, 64>}, {transform_indices = @transform_2, window_bounds = array<i64: 2, 32, 64>}, {transform_indices = @transform_3, window_bounds = array<i64: 2, 32, 64>}, {transform_indices = @transform_4, window_bounds = array<i64: 4, 32, 32>}, {pipeline_mode = #tpu.pipeline_mode<synchronous>, transform_indices = @transform_5, window_bounds = array<i64: 32, 10>}, {pipeline_mode = #tpu.pipeline_mode<synchronous>, transform_indices = @transform_6, window_bounds = array<i64: 1, 10>}, {transform_indices = @transform_7, window_bounds = array<i64: 2, 10>}]} {
    %c0_i32 = arith.constant 0 : i32
    %0 = arith.cmpi eq, %arg1, %c0_i32 : i32
    %1 = arith.extui %0 : i1 to i32
    %c0_i32_0 = arith.constant 0 : i32
    %2 = arith.cmpi ne, %1, %c0_i32_0 : i32
    scf.if %2 {
      %cst_35 = arith.constant 0.000000e+00 : f32
      %34 = vector.broadcast %cst_35 : f32 to vector<2x32xf32>
      %c0_36 = arith.constant 0 : index
      %c0_37 = arith.constant 0 : index
      %35 = vector.load %arg10[%c0_36, %c0_37] : memref<2x32xf32, #tpu.memory_space<vmem>>, vector<2x32xf32>
      tpu.vector_store %arg10[%c0_36, %c0_37], %34 {strides = array<i32>} : memref<2x32xf32, #tpu.memory_space<vmem>>, vector<2x32xf32>,
    } else {
    }
    %cst = arith.constant 0.000000e+00 : f32
    %3 = vector.broadcast %cst : f32 to vector<2x32xf32>
    %c0 = arith.constant 0 : index
    %c0_1 = arith.constant 0 : index
    %c0_2 = arith.constant 0 : index
    %4 = vector.load %arg2[%c0, %c0_1, %c0_2] : memref<2x32x64xf32, #tpu.memory_space<vmem>>, vector<2x32x64xf32>
    %cst_3 = arith.constant dense<0.000000e+00> : vector<2x32xf32>
    %5 = vector.multi_reduction <add>, %4, %cst_3 [2] : vector<2x32x64xf32> to vector<2x32xf32>
    %c0_4 = arith.constant 0 : index
    %c0_5 = arith.constant 0 : index
    %c0_6 = arith.constant 0 : index
    %6 = vector.load %arg6[%c0_4, %c0_5, %c0_6] : memref<4x32x32xf32, #tpu.memory_space<vmem>>, vector<1x32x32xf32>
    %7 = vector.shape_cast %6 : vector<1x32x32xf32> to vector<32x32xf32>
    %cst_7 = arith.constant dense<0.000000e+00> : vector<2x32xf32>
    %8 = tpu.matmul %5, %7, %cst_7 {dimension_numbers = #tpu.dot_dimension_numbers<[1], [0], [0], [1], [0, 0, 1, 1], [], []>} : vector<2x32xf32>, vector<32x32xf32>, vector<2x32xf32> -> vector<2x32xf32>
    %9 = arith.addf %3, %8 : vector<2x32xf32>
    %c0_8 = arith.constant 0 : index
    %c0_9 = arith.constant 0 : index
    %c0_10 = arith.constant 0 : index
    %10 = vector.load %arg3[%c0_8, %c0_9, %c0_10] : memref<2x32x64xf32, #tpu.memory_space<vmem>>, vector<2x32x64xf32>
    %cst_11 = arith.constant dense<0.000000e+00> : vector<2x32xf32>
    %11 = vector.multi_reduction <add>, %10, %cst_11 [2] : vector<2x32x64xf32> to vector<2x32xf32>
    %c1 = arith.constant 1 : index
    %c0_12 = arith.constant 0 : index
    %c0_13 = arith.constant 0 : index
    %12 = vector.load %arg6[%c1, %c0_12, %c0_13] : memref<4x32x32xf32, #tpu.memory_space<vmem>>, vector<1x32x32xf32>
    %13 = vector.shape_cast %12 : vector<1x32x32xf32> to vector<32x32xf32>
    %cst_14 = arith.constant dense<0.000000e+00> : vector<2x32xf32>
    %14 = tpu.matmul %11, %13, %cst_14 {dimension_numbers = #tpu.dot_dimension_numbers<[1], [0], [0], [1], [0, 0, 1, 1], [], []>} : vector<2x32xf32>, vector<32x32xf32>, vector<2x32xf32> -> vector<2x32xf32>
    %15 = arith.addf %9, %14 : vector<2x32xf32>
    %c0_15 = arith.constant 0 : index
    %c0_16 = arith.constant 0 : index
    %c0_17 = arith.constant 0 : index
    %16 = vector.load %arg4[%c0_15, %c0_16, %c0_17] : memref<2x32x64xf32, #tpu.memory_space<vmem>>, vector<2x32x64xf32>
    %cst_18 = arith.constant dense<0.000000e+00> : vector<2x32xf32>
    %17 = vector.multi_reduction <add>, %16, %cst_18 [2] : vector<2x32x64xf32> to vector<2x32xf32>
    %c2 = arith.constant 2 : index
    %c0_19 = arith.constant 0 : index
    %c0_20 = arith.constant 0 : index
    %18 = vector.load %arg6[%c2, %c0_19, %c0_20] : memref<4x32x32xf32, #tpu.memory_space<vmem>>, vector<1x32x32xf32>
    %19 = vector.shape_cast %18 : vector<1x32x32xf32> to vector<32x32xf32>
    %cst_21 = arith.constant dense<0.000000e+00> : vector<2x32xf32>
    %20 = tpu.matmul %17, %19, %cst_21 {dimension_numbers = #tpu.dot_dimension_numbers<[1], [0], [0], [1], [0, 0, 1, 1], [], []>} : vector<2x32xf32>, vector<32x32xf32>, vector<2x32xf32> -> vector<2x32xf32>
    %21 = arith.addf %15, %20 : vector<2x32xf32>
    %c0_22 = arith.constant 0 : index
    %c0_23 = arith.constant 0 : index
    %c0_24 = arith.constant 0 : index
    %22 = vector.load %arg5[%c0_22, %c0_23, %c0_24] : memref<2x32x64xf32, #tpu.memory_space<vmem>>, vector<2x32x64xf32>
    %cst_25 = arith.constant dense<0.000000e+00> : vector<2x32xf32>
    %23 = vector.multi_reduction <add>, %22, %cst_25 [2] : vector<2x32x64xf32> to vector<2x32xf32>
    %c3 = arith.constant 3 : index
    %c0_26 = arith.constant 0 : index
    %c0_27 = arith.constant 0 : index
    %24 = vector.load %arg6[%c3, %c0_26, %c0_27] : memref<4x32x32xf32, #tpu.memory_space<vmem>>, vector<1x32x32xf32>
    %25 = vector.shape_cast %24 : vector<1x32x32xf32> to vector<32x32xf32>
    %cst_28 = arith.constant dense<0.000000e+00> : vector<2x32xf32>
    %26 = tpu.matmul %23, %25, %cst_28 {dimension_numbers = #tpu.dot_dimension_numbers<[1], [0], [0], [1], [0, 0, 1, 1], [], []>} : vector<2x32xf32>, vector<32x32xf32>, vector<2x32xf32> -> vector<2x32xf32>
    %27 = arith.addf %21, %26 : vector<2x32xf32>
    %c0_29 = arith.constant 0 : index
    %c0_30 = arith.constant 0 : index
    %28 = vector.load %arg10[%c0_29, %c0_30] : memref<2x32xf32, #tpu.memory_space<vmem>>, vector<2x32xf32>
    %29 = arith.addf %28, %27 : vector<2x32xf32>
    %c0_31 = arith.constant 0 : index
    %c0_32 = arith.constant 0 : index
    %30 = vector.load %arg10[%c0_31, %c0_32] : memref<2x32xf32, #tpu.memory_space<vmem>>, vector<2x32xf32>
    tpu.vector_store %arg10[%c0_31, %c0_32], %29 {strides = array<i32>} : memref<2x32xf32, #tpu.memory_space<vmem>>, vector<2x32xf32>,
    %c0_i32_33 = arith.constant 0 : i32
    %31 = arith.cmpi eq, %arg1, %c0_i32_33 : i32
    %32 = arith.extui %31 : i1 to i32
    %c0_i32_34 = arith.constant 0 : i32
    %33 = arith.cmpi ne, %32, %c0_i32_34 : i32
    scf.if %33 {
      %c0_35 = arith.constant 0 : index
      %c0_36 = arith.constant 0 : index
      %34 = vector.load %arg10[%c0_35, %c0_36] : memref<2x32xf32, #tpu.memory_space<vmem>>, vector<2x32xf32>
      %cst_37 = arith.constant 1.562500e-02 : f32
      %35 = vector.broadcast %cst_37 : f32 to vector<2x32xf32>
      %36 = arith.mulf %34, %35 : vector<2x32xf32>
      %c0_38 = arith.constant 0 : index
      %c0_39 = arith.constant 0 : index
      %37 = vector.load %arg7[%c0_38, %c0_39] : memref<32x10xf32, #tpu.memory_space<vmem>>, vector<32x10xf32>
      %cst_40 = arith.constant dense<0.000000e+00> : vector<2x10xf32>
      %38 = tpu.matmul %36, %37, %cst_40 {dimension_numbers = #tpu.dot_dimension_numbers<[1], [0], [0], [1], [0, 0, 1, 1], [], []>} : vector<2x32xf32>, vector<32x10xf32>, vector<2x10xf32> -> vector<2x10xf32>
      %c0_41 = arith.constant 0 : index
      %c0_42 = arith.constant 0 : index
      %39 = vector.load %arg8[%c0_41, %c0_42] : memref<1x10xf32, #tpu.memory_space<vmem>>, vector<1x10xf32>
      %40 = vector.broadcast %39 : vector<1x10xf32> to vector<2x10xf32>
      %41 = arith.addf %38, %40 : vector<2x10xf32>
      %c0_43 = arith.constant 0 : index
      %c0_44 = arith.constant 0 : index
      %42 = vector.load %arg9[%c0_43, %c0_44] : memref<2x10xf32, #tpu.memory_space<vmem>>, vector<2x10xf32>
      tpu.vector_store %arg9[%c0_43, %c0_44], %41 {strides = array<i32>} : memref<2x10xf32, #tpu.memory_space<vmem>>, vector<2x10xf32>,
    } else {
    }
    return
  }
  func.func @transform_0(%arg0: i32, %arg1: i32) -> (i32, i32, i32) {
    %c0_i32 = arith.constant 0 : i32
    %c0_i32_0 = arith.constant 0 : i32
    return %arg0, %arg1, %c0_i32 : i32, i32, i32
  }
  func.func @transform_1(%arg0: i32, %arg1: i32) -> (i32, i32, i32) {
    %c0_i32 = arith.constant 0 : i32
    %c0_i32_0 = arith.constant 0 : i32
    return %arg0, %arg1, %c0_i32 : i32, i32, i32
  }
  func.func @transform_2(%arg0: i32, %arg1: i32) -> (i32, i32, i32) {
    %c0_i32 = arith.constant 0 : i32
    %c0_i32_0 = arith.constant 0 : i32
    return %arg0, %arg1, %c0_i32 : i32, i32, i32
  }
  func.func @transform_3(%arg0: i32, %arg1: i32) -> (i32, i32, i32) {
    %c0_i32 = arith.constant 0 : i32
    %c0_i32_0 = arith.constant 0 : i32
    return %arg0, %arg1, %c0_i32 : i32, i32, i32
  }
  func.func @transform_4(%arg0: i32, %arg1: i32) -> (i32, i32, i32) {
    %c0_i32 = arith.constant 0 : i32
    %c0_i32_0 = arith.constant 0 : i32
    %c0_i32_1 = arith.constant 0 : i32
    return %c0_i32, %arg1, %c0_i32_0 : i32, i32, i32
  }
  func.func @transform_5(%arg0: i32, %arg1: i32) -> (i32, i32) {
    %c0_i32 = arith.constant 0 : i32
    %c0_i32_0 = arith.constant 0 : i32
    %c0_i32_1 = arith.constant 0 : i32
    return %c0_i32, %c0_i32_0 : i32, i32
  }
  func.func @transform_6(%arg0: i32, %arg1: i32) -> (i32, i32) {
    %c0_i32 = arith.constant 0 : i32
    %c0_i32_0 = arith.constant 0 : i32
    %c0_i32_1 = arith.constant 0 : i32
    return %c0_i32, %c0_i32_0 : i32, i32
  }
  func.func @transform_7(%arg0: i32, %arg1: i32) -> (i32, i32) {
    %c0_i32 = arith.constant 0 : i32
    %c0_i32_0 = arith.constant 0 : i32
    return %arg0, %c0_i32 : i32, i32
  }
}

</mosaic_0001>

<bundles_post_ra>
// kernel: tpu_custom_call.1
= control target key start
LH: loop header
LB: loop body
LE: loop exit
PB: predicated region body
PF: predicated region fallthrough
CT: control target
= control target key end

     0   :  { %12 = vsyncpa [#allocation4], 0  ;;  %s1506_s0 = inlined_call_operand.hbm [shape: f32[2,32,64], index: 0, kind: input, shape index: {}]   ;;  %s1507_s1 = inlined_call_operand.hbm [shape: f32[2,32,64], index: 1, kind: input, shape index: {}]   ;;  %s1508_s2 = inlined_call_operand.hbm [shape: f32[2,32,64], index: 2, kind: input, shape index: {}]   ;;  %s1509_s3 = inlined_call_operand.hbm [shape: f32[2,32,64], index: 3, kind: input, shape index: {}]   ;;  %s1510_s4 = inlined_call_operand.hbm [shape: f32[4,32,32], index: 4, kind: input, shape index: {}]   ;;  %s1511_s5 = inlined_call_operand.hbm [shape: f32[32,10], index: 5, kind: input, shape index: {}]   ;;  %s1512_s6 = inlined_call_operand.hbm [shape: f32[1,10], index: 6, kind: input, shape index: {}]   ;;  %s1513_s7 = inlined_call_operand.hbm [shape: f32[2,10], index: 7, kind: output, shape index: {}]  }
   0x1   :  { %13 = vsyncpa [#allocation7], 0 }
   0x2   :  { %14 = vsyncpa [#allocation10], 0 }
   0x3   :  { %15 = vsyncpa [#allocation13], 0 }
   0x4   :  { %16 = vsyncpa [#allocation5], 0  ;;  %s1190_s24 = smov [#allocation6]   ;;  %s1191_s26 = smov [#allocation9]  }
   0x5   :  { %s34_s25 = sshll.u32 %s1190_s24, 4  ;;  %s58_s27 = sshll.u32 %s1191_s26, 4  ;;  %s35_s25 = int_to_ptr.vmem [resolvable:$true] %s34_s25  ;;  %s1243_s27 = int_to_ptr.vmem [resolvable:$true] %s58_s27 }
   0x6   :  { %s1004_s30 = scalar_lea.hbm %s1507_s1, 1024 }
   0x7   :  { %p1005_p0 = scmp.ne.s32.totalorder %s1507_s1, %s1004_s30  ;;  %p1008_p1 = scmp.lt.u32.totalorder %s1004_s30, %s1507_s1 }
   0x9   :  { %p1010_p2 = pnand %p1008_p1, %p1005_p0 }
   0xb   :  { %1013 = shalt.err (!%p1010_p2)
}
   0xc   :  { %s1014_s12 = scalar_lea.vmem %s35_s25, 1024  ;;  %p1019_p4 = scmp.lt.s32.totalorder %s35_s25, %s35_s25 }
   0xd   :  { %p1015_p3 = scmp.ne.s32.totalorder %s35_s25, %s1014_s12  ;;  %p1020_p5 = scmp.lt.s32.totalorder %s1014_s12, %s1014_s12 }
   0xf   :  { %p1021_p6 = por %p1020_p5, %p1019_p4 }
  0x11   :  { %p1022_p7 = pnand %p1021_p6, %p1015_p3 }
  0x13   :  { %1025 = shalt.err (!%p1022_p7)
}
  0x14   :  { %s1192_s13 = smov 128   ;;  %s1193_s14 = smov 8  }
  0x15   :  { %40 = dma.hbm_to_vmem [thread:$0]  %s1507_s1, 1024, %s35_s25, [#allocation7], %s1192_s13, %s1192_s13, %s1193_s14  }
  0x16   :  { %s1026_s19 = scalar_lea.hbm %s1509_s3, 1024 }
  0x17   :  { %p1027_p8 = scmp.ne.s32.totalorder %s1509_s3, %s1026_s19  ;;  %p1030_p9 = scmp.lt.u32.totalorder %s1026_s19, %s1509_s3 }
  0x19   :  { %p1032_p10 = pnand %p1030_p9, %p1027_p8 }
  0x1b   :  { %1035 = shalt.err (!%p1032_p10)
}
  0x1c   :  { %s1036_s24 = scalar_lea.vmem %s1243_s27, 1024  ;;  %p1041_p12 = scmp.lt.s32.totalorder %s1243_s27, %s1243_s27 }
  0x1d   :  { %p1037_p11 = scmp.ne.s32.totalorder %s1243_s27, %s1036_s24  ;;  %p1042_p13 = scmp.lt.s32.totalorder %s1036_s24, %s1036_s24 }
  0x1f   :  { %p1043_p0 = por %p1042_p13, %p1041_p12 }
  0x21   :  { %p1044_p1 = pnand %p1043_p0, %p1037_p11 }
  0x23   :  { %1047 = shalt.err (!%p1044_p1)
}
  0x24   :  { %64 = dma.hbm_to_vmem [thread:$0]  %s1509_s3, 1024, %s1243_s27, [#allocation10], %s1192_s13, %s1192_s13, %s1193_s14  }
  0x25   :  { %s1194_s26 = smov [#allocation12]   ;;  %s1195_s29 = smov [#allocation3]  }
  0x26   :  { %s82_s28 = sshll.u32 %s1194_s26, 4  ;;  %s22_s30 = sshll.u32 %s1195_s29, 4  ;;  %s83_s28 = int_to_ptr.vmem [resolvable:$true] %s82_s28  ;;  %s1280_s30 = int_to_ptr.vmem [resolvable:$true] %s22_s30 }
  0x27   :  { %s1048_s10 = scalar_lea.hbm %s1511_s5, 512 }
  0x28   :  { %p1049_p2 = scmp.ne.s32.totalorder %s1511_s5, %s1048_s10  ;;  %p1052_p3 = scmp.lt.u32.totalorder %s1048_s10, %s1511_s5 }
  0x2a   :  { %p1054_p4 = pnand %p1052_p3, %p1049_p2 }
  0x2c   :  { %1057 = shalt.err (!%p1054_p4)
}
  0x2d   :  { %s1058_s3 = scalar_lea.vmem %s83_s28, 512  ;;  %p1063_p6 = scmp.lt.s32.totalorder %s83_s28, %s83_s28 }
  0x2e   :  { %p1059_p5 = scmp.ne.s32.totalorder %s83_s28, %s1058_s3  ;;  %p1064_p7 = scmp.lt.s32.totalorder %s1058_s3, %s1058_s3 }
  0x30   :  { %p1065_p8 = por %p1064_p7, %p1063_p6 }
  0x32   :  { %p1066_p9 = pnand %p1065_p8, %p1059_p5 }
  0x34   :  { %1069 = shalt.err (!%p1066_p9)
}
  0x35   :  { %88 = dma.hbm_to_vmem [thread:$0]  %s1511_s5, 512, %s83_s28, [#allocation13], %s1192_s13, %s1192_s13, %s1193_s14  }
  0x36   :  { %s1070_s20 = scalar_lea.hbm %s1506_s0, 1024 }
  0x37   :  { %p1071_p10 = scmp.ne.s32.totalorder %s1506_s0, %s1070_s20  ;;  %p1074_p11 = scmp.lt.u32.totalorder %s1070_s20, %s1506_s0 }
  0x39   :  { %p1076_p12 = pnand %p1074_p11, %p1071_p10 }
  0x3b   :  { %1079 = shalt.err (!%p1076_p12)
}
  0x3c   :  { %s1080_s1 = scalar_lea.vmem %s1280_s30, 1024  ;;  %p1085_p0 = scmp.lt.s32.totalorder %s1280_s30, %s1280_s30 }
  0x3d   :  { %p1081_p13 = scmp.ne.s32.totalorder %s1280_s30, %s1080_s1  ;;  %p1086_p1 = scmp.lt.s32.totalorder %s1080_s1, %s1080_s1 }
  0x3f   :  { %p1087_p2 = por %p1086_p1, %p1085_p0 }
  0x41   :  { %p1088_p3 = pnand %p1087_p2, %p1081_p13 }
  0x43   :  { %1091 = shalt.err (!%p1088_p3)
}
  0x44   :  { %28 = dma.hbm_to_vmem [thread:$0]  %s1506_s0, 1024, %s1280_s30, [#allocation4], %s1192_s13, %s1192_s13, %s1193_s14  }
  0x45   :  { %s1196_s26 = smov [#allocation8]   ;;  %s1197_s29 = smov [#allocation11]  }
  0x46   :  { %s46_s28 = sshll.u32 %s1196_s26, 4  ;;  %s70_s8 = sshll.u32 %s1197_s29, 4  ;;  %s47_s28 = int_to_ptr.vmem [resolvable:$true] %s46_s28  ;;  %s1317_s8 = int_to_ptr.vmem [resolvable:$true] %s70_s8 }
  0x47   :  { %s1092_s11 = scalar_lea.hbm %s1508_s2, 1024 }
  0x48   :  { %p1093_p4 = scmp.ne.s32.totalorder %s1508_s2, %s1092_s11  ;;  %p1096_p5 = scmp.lt.u32.totalorder %s1092_s11, %s1508_s2 }
  0x4a   :  { %p1098_p6 = pnand %p1096_p5, %p1093_p4 }
  0x4c   :  { %1101 = shalt.err (!%p1098_p6)
}
  0x4d   :  { %s1102_s0 = scalar_lea.vmem %s47_s28, 1024  ;;  %p1107_p8 = scmp.lt.s32.totalorder %s47_s28, %s47_s28 }
  0x4e   :  { %p1103_p7 = scmp.ne.s32.totalorder %s47_s28, %s1102_s0  ;;  %p1108_p9 = scmp.lt.s32.totalorder %s1102_s0, %s1102_s0 }
  0x50   :  { %p1109_p10 = por %p1108_p9, %p1107_p8 }
  0x52   :  { %p1110_p11 = pnand %p1109_p10, %p1103_p7 }
  0x54   :  { %1113 = shalt.err (!%p1110_p11)
}
  0x55   :  { %52 = dma.hbm_to_vmem [thread:$0]  %s1508_s2, 1024, %s47_s28, [#allocation7], %s1192_s13, %s1192_s13, %s1193_s14  }
  0x56   :  { %s1114_s19 = scalar_lea.hbm %s1510_s4, 2048 }
  0x57   :  { %p1115_p12 = scmp.ne.s32.totalorder %s1510_s4, %s1114_s19  ;;  %p1118_p13 = scmp.lt.u32.totalorder %s1114_s19, %s1510_s4 }
  0x59   :  { %p1120_p0 = pnand %p1118_p13, %p1115_p12 }
  0x5b   :  { %1123 = shalt.err (!%p1120_p0)
}
  0x5c   :  { %s1124_s24 = scalar_lea.vmem %s1317_s8, 2048  ;;  %p1129_p2 = scmp.lt.s32.totalorder %s1317_s8, %s1317_s8 }
  0x5d   :  { %p1125_p1 = scmp.ne.s32.totalorder %s1317_s8, %s1124_s24  ;;  %p1130_p3 = scmp.lt.s32.totalorder %s1124_s24, %s1124_s24 }
  0x5f   :  { %p1131_p4 = por %p1130_p3, %p1129_p2 }
  0x61   :  { %p1132_p5 = pnand %p1131_p4, %p1125_p1 }
  0x63   :  { %1135 = shalt.err (!%p1132_p5)
}
  0x64   :  { %76 = dma.hbm_to_vmem [thread:$0]  %s1510_s4, 2048, %s1317_s8, [#allocation10], %s1192_s13, %s1192_s13, %s1193_s14  }
  0x65   :  { %s1198_s5 = smov [#allocation14]   ;;  %s1136_s29 = scalar_lea.hbm %s1512_s6, 16 }
  0x66   :  { %s95_s25 = sshll.u32 %s1198_s5, 4  ;;  %p1137_p6 = scmp.ne.s32.totalorder %s1512_s6, %s1136_s29  ;;  %s96_s25 = int_to_ptr.vmem [resolvable:$true] %s95_s25 }
  0x67   :  { %p1140_p7 = scmp.lt.u32.totalorder %s1136_s29, %s1512_s6 }
  0x69   :  { %p1142_p8 = pnand %p1140_p7, %p1137_p6 }
  0x6b   :  { %1145 = shalt.err (!%p1142_p8)
}
  0x6c   :  { %s1146_s15 = scalar_lea.vmem %s96_s25, 16  ;;  %s1150_s4 = scalar_lea.vmem %s96_s25, 32 }
  0x6d   :  { %p1147_p9 = scmp.ne.s32.totalorder %s96_s25, %s1146_s15  ;;  %p1151_p10 = scmp.lt.s32.totalorder %s96_s25, %s96_s25 }
  0x6e   :  { %p1152_p11 = scmp.lt.s32.totalorder %s1150_s4, %s1146_s15 }
  0x70   :  { %p1153_p12 = por %p1152_p11, %p1151_p10 }
  0x72   :  { %p1154_p13 = pnand %p1153_p12, %p1147_p9 }
  0x74   :  { %1157 = shalt.err (!%p1154_p13)
}
  0x75   :  { %98 = dma.hbm_to_vmem [thread:$0]  %s1512_s6, 16, %s96_s25, [#allocation13]  }
  0x76   :  { %1180 = dma.done.wait [#allocation4], 1024  }
  0x77   :  { %1181 = vsyncadd [#allocation4], 4294966272 }
  0x78   :  { %1182 = dma.done.wait [#allocation7], 2048  }
  0x79   :  { %1183 = vsyncadd [#allocation7], 4294965248 }
  0x7a   :  { %1184 = dma.done.wait [#allocation10], 3072  }
  0x7b   :  { %1185 = vsyncadd [#allocation10], 4294964224 }
  0x7c   :  { %1186 = dma.done.wait [#allocation13], 528  }
  0x7d   :  { %1187 = vsyncadd [#allocation13], 4294966768  ;;  %vm134_vm0 = vcmask 523264   ;;  %v167_v0 = vld [vmem:[#allocation6 + $0x20] sm:$0xff]  ;;  %v168_v2 = vld [vmem:[#allocation6 + $0x28] sm:$0xff]  ;;  %v1199_v41 = vmov 0.0|0.0  }
  0x7e   :  { %v163_v1 = vld [vmem:[#allocation6] sm:$0xff]  ;;  %v183_v3 = vsel %vm134_vm0, %v167_v0, 0.0  ;;  %v164_v5 = vld [vmem:[#allocation6 + $0x8] sm:$0xff]  ;;  %v186_v6 = vsel %vm134_vm0, %v168_v2, 0.0  ;;  %v169_v8 = vld [vmem:[#allocation6 + $0x30] sm:$0xff]  ;;  %961 = vmatprep.subr.bf16.mxu0 %v1199_v41  ;;  %967 = vmatprep.subr.bf16.mxu1 %v1199_v41  ;;  %vm1200_vm1 = vmmov 0  }
  0x7f   :  { %v171_v4 = vsel %vm134_vm0, %v163_v1, 0.0  ;;  %184 = vadd.xlane.f32.xlu1 %v183_v3  ;;  %v174_v7 = vsel %vm134_vm0, %v164_v5, 0.0  ;;  %v165_v9 = vld [vmem:[#allocation6 + $0x10] sm:$0xff]  ;;  %v189_v10 = vsel %vm134_vm0, %v169_v8, 0.0  ;;  %v127_v12 = vld [vmem:[#allocation3 + $0x8] sm:$0xff]  ;;  %v126_v13 = vld [vmem:[#allocation3] sm:$0xff] }
  0x80   :  { %172 = vadd.xlane.f32.xlu0 %v171_v4  ;;  %v177_v11 = vsel %vm134_vm0, %v165_v9, 0.0  ;;  %v138_v14 = vsel %vm134_vm0, %v127_v12, 0.0  ;;  %v135_v15 = vsel %vm134_vm0, %v126_v13, 0.0  ;;  %v131_v16 = vld [vmem:[#allocation3 + $0x28] sm:$0xff]  ;;  %v130_v17 = vld [vmem:[#allocation3 + $0x20] sm:$0xff]  ;;  %v170_v20 = vld [vmem:[#allocation6 + $0x38] sm:$0xff] }
  0x81   :  { %v150_v18 = vsel %vm134_vm0, %v131_v16, 0.0  ;;  %v147_v19 = vsel %vm134_vm0, %v130_v17, 0.0  ;;  %v166_v21 = vld [vmem:[#allocation6 + $0x18] sm:$0xff]  ;;  %v192_v22 = vsel %vm134_vm0, %v170_v20, 0.0  ;;  %v132_v24 = vld [vmem:[#allocation3 + $0x30] sm:$0xff]  ;;  %v449_v32 = vld [vmem:[#allocation8 + $0x8] sm:$0xff]  ;;  %v208_v16 = vlaneseq }
  0x82   :  { %v180_v23 = vsel %vm134_vm0, %v166_v21, 0.0  ;;  %v128_v25 = vld [vmem:[#allocation3 + $0x10] sm:$0xff]  ;;  %v153_v26 = vsel %vm134_vm0, %v132_v24, 0.0  ;;  %v133_v28 = vld [vmem:[#allocation3 + $0x38] sm:$0xff]  ;;  %v448_v33 = vld [vmem:[#allocation8] sm:$0xff]  ;;  %v459_v36 = vsel %vm134_vm0, %v449_v32, 0.0 }
  0x83   :  { %187 = vadd.xlane.f32.xlu1 %v186_v6  ;;  %v141_v27 = vsel %vm134_vm0, %v128_v25, 0.0  ;;  %v129_v29 = vld [vmem:[#allocation3 + $0x18] sm:$0xff]  ;;  %v156_v30 = vsel %vm134_vm0, %v133_v28, 0.0  ;;  %v196_v34 = vld [vmem:[#allocation11 + $0x20] sm:$0xff]  ;;  %v197_v35 = vld [vmem:[#allocation11 + $0x28] sm:$0xff]  ;;  %v456_v37 = vsel %vm134_vm0, %v448_v33, 0.0 }
  0x84   :  { %175 = vadd.xlane.f32.xlu0 %v174_v7  ;;  %v144_v31 = vsel %vm134_vm0, %v129_v29, 0.0  ;;  %v962_v38 = vpack.c.bf16 %v197_v35, %v196_v34  ;;  %v453_v39 = vld [vmem:[#allocation8 + $0x28] sm:$0xff]  ;;  %v452_v40 = vld [vmem:[#allocation8 + $0x20] sm:$0xff]  ;;  %v198_v42 = vld [vmem:[#allocation11 + $0x30] sm:$0xff]  ;;  %v1201_v53 = vmov 0.0   ;;  %v211_v24 = vshrl.u32 %v208_v16, 7 }
  0x85   :  { %v199_v43 = vld [vmem:[#allocation11 + $0x38] sm:$0xff]  ;;  %v471_v44 = vsel %vm134_vm0, %v453_v39, 0.0  ;;  %v468_v45 = vsel %vm134_vm0, %v452_v40, 0.0  ;;  %v454_v47 = vld [vmem:[#allocation8 + $0x30] sm:$0xff]  ;;  %v159_v49 = vld [vmem:[#allocation11] sm:$0xff]  ;;  %914 = vmatprep.mubr.msk.f32.mxu0 %vm1200_vm1, %v1201_v53  ;;  %925 = vmatprep.mubr.msk.f32.mxu1 %vm1200_vm1, %v1201_v53  ;;  %vm219_vm2 = vcmask 130112  }
  0x86   :  { %963 = vmatpush3.bf16.msra.mxu0 %v962_v38  ;;  %v965_v46 = vpack.c.bf16 %v199_v43, %v198_v42  ;;  %v450_v48 = vld [vmem:[#allocation8 + $0x10] sm:$0xff]  ;;  %v160_v50 = vld [vmem:[#allocation11 + $0x8] sm:$0xff]  ;;  %v474_v51 = vsel %vm134_vm0, %v454_v47, 0.0  ;;  %v455_v55 = vld [vmem:[#allocation8 + $0x38] sm:$0xff]  ;;  %vm226_vm3 = vcmask 195712   ;;  %vm233_vm4 = vcmask 261312  }
  0x87   :  { %190 = vadd.xlane.f32.xlu1 %v189_v10  ;;  %964 = vmatprep.subr.bf16.mxu0 %v1199_v41  ;;  %v462_v52 = vsel %vm134_vm0, %v450_v48, 0.0  ;;  %v968_v54 = vpack.c.bf16 %v160_v50, %v159_v49  ;;  %v451_v56 = vld [vmem:[#allocation8 + $0x18] sm:$0xff]  ;;  %v161_v57 = vld [vmem:[#allocation11 + $0x10] sm:$0xff]  ;;  %v477_v59 = vsel %vm134_vm0, %v455_v55, 0.0  ;;  %v606_v62 = vld [vmem:[#allocation9 + $0x8] sm:$0xff]  ;;  %vm254_vm5 = vcmask 1041409  }
  0x88   :  { %178 = vadd.xlane.f32.xlu0 %v177_v11  ;;  %v162_v58 = vld [vmem:[#allocation11 + $0x18] sm:$0xff]  ;;  %v465_v60 = vsel %vm134_vm0, %v451_v56, 0.0  ;;  %v605_v63 = vld [vmem:[#allocation9] sm:$0xff]  ;;  %v616_v0 = vsel %vm134_vm0, %v606_v62, 0.0  ;;  %v610_v2 = vld [vmem:[#allocation9 + $0x28] sm:$0xff]  ;;  %vm256_vm6 = vcmask 261120  }
  0x89   :  { %969 = vmatpush3.bf16.msra.mxu1 %v968_v54  ;;  %v971_v61 = vpack.c.bf16 %v162_v58, %v161_v57  ;;  %v613_v1 = vsel %vm134_vm0, %v605_v63, 0.0  ;;  %v609_v3 = vld [vmem:[#allocation9 + $0x20] sm:$0xff]  ;;  %v628_v4 = vsel %vm134_vm0, %v610_v2, 0.0  ;;  %v611_v6 = vld [vmem:[#allocation9 + $0x30] sm:$0xff]  ;;  %v612_v10 = vld [vmem:[#allocation9 + $0x38] sm:$0xff]  ;;  %vm124_vm7 = vcmask 254976  }
  0x8a   :  { %966 = vmatpush3.bf16.msra.mxu0 %v965_v46  ;;  %970 = vmatprep.subr.bf16.mxu1 %v1199_v41  ;;  %v625_v5 = vsel %vm134_vm0, %v609_v3, 0.0  ;;  %v607_v7 = vld [vmem:[#allocation9 + $0x10] sm:$0xff]  ;;  %v631_v8 = vsel %vm134_vm0, %v611_v6, 0.0  ;;  %v608_v11 = vld [vmem:[#allocation9 + $0x18] sm:$0xff]  ;;  %v634_v12 = vsel %vm134_vm0, %v612_v10, 0.0  ;;  %v481_v40 = vld [vmem:[#allocation11 + $0x40] sm:$0xff] }
  0x8b   :  { %139 = vadd.xlane.f32.xlu1 %v138_v14  ;;  %973 = vmatprep.subr.bf16.mxu0 %v1199_v41  ;;  %v619_v9 = vsel %vm134_vm0, %v607_v7, 0.0  ;;  %v622_v13 = vsel %vm134_vm0, %v608_v11, 0.0  ;;  %v482_v42 = vld [vmem:[#allocation11 + $0x48] sm:$0xff]  ;;  %v483_v55 = vld [vmem:[#allocation11 + $0x50] sm:$0xff]  ;;  %v484_v56 = vld [vmem:[#allocation11 + $0x58] sm:$0xff]  ;;  %s1202_s6 = smov [#allocation15]  }
  0x8c   :  { %136 = vadd.xlane.f32.xlu0 %v135_v15  ;;  %v977_v2 = vpack.c.bf16 %v484_v56, %v483_v55  ;;  %v638_v3 = vld [vmem:[#allocation11 + $0x60] sm:$0xff]  ;;  %125 = vst.msk [vmem:[#allocation2] sm:$0x3] %vm124_vm7, %v1201_v53  ;;  %s863_s8 = sshll.u32 %s1202_s6, 4  ;;  %vm855_vm8 = vcmask 74752   ;;  %s864_s8 = int_to_ptr.vmem [resolvable:$true] %s863_s8 }
  0x8d   :  { %972 = vmatpush3.bf16.msra.mxu1 %v971_v61  ;;  %s1158_s16 = scalar_lea.vmem %s864_s8, 32  ;;  %p1163_p1 = scmp.lt.s32.totalorder %s864_s8, %s864_s8 }
  0x8e   :  { %979 = vmatprep.subr.bf16.mxu1 %v1199_v41  ;;  %p1159_p0 = scmp.ne.s32.totalorder %s864_s8, %s1158_s16  ;;  %p1164_p2 = scmp.lt.s32.totalorder %s1158_s16, %s1158_s16 }
  0x8f   :  { %151 = vadd.xlane.f32.xlu1 %v150_v18 }
  0x90   :  { %148 = vadd.xlane.f32.xlu0 %v147_v19  ;;  %v209_v19 = vand.u32 127, %v208_v16  ;;  %v640_v16 = vld [vmem:[#allocation11 + $0x70] sm:$0xff]  ;;  %p1165_p3 = por %p1164_p2, %p1163_p1 }
  0x92   :  { %v228_v28 = vadd.s32 4294967272, %v209_v19  ;;  %p1166_p4 = pnand %p1165_p3, %p1159_p0 }
  0x93   :  { %193 = vadd.xlane.f32.xlu1 %v192_v22  ;;  %v214_v22 = vadd.s32 4294967288, %v209_v19 }
  0x94   :  { %181 = vadd.xlane.f32.xlu0 %v180_v23  ;;  %v221_v23 = vadd.s32 4294967280, %v209_v19  ;;  %v1416_v35 = vsub.s32 %v228_v28, %v211_v24 }
  0x96   :  { %v1410_v29 = vsub.s32 %v221_v23, %v211_v24 }
  0x97   :  { %154 = vadd.xlane.f32.xlu1 %v153_v26 }
  0x98   :  { %142 = vadd.xlane.f32.xlu0 %v141_v27  ;;  %v1408_v27 = vsub.s32 %v214_v22, %v211_v24 }
  0x9b   :  { %157 = vadd.xlane.f32.xlu1 %v156_v30  ;;  %v1412_v30 = vsub.s32 %v209_v19, %v211_v24 }
  0x9c   :  { %145 = vadd.xlane.f32.xlu0 %v144_v31 }
  0x9f   :  { %460 = vadd.xlane.f32.xlu1 %v459_v36 }
  0xa0   :  { %457 = vadd.xlane.f32.xlu0 %v456_v37 }
  0xa3   :  { %472 = vadd.xlane.f32.xlu1 %v471_v44 }
  0xa4   :  { %469 = vadd.xlane.f32.xlu0 %v468_v45 }
  0xa7   :  { %475 = vadd.xlane.f32.xlu1 %v474_v51  ;;  %v974_v51 = vpack.c.bf16 %v482_v42, %v481_v40 }
  0xa8   :  { %463 = vadd.xlane.f32.xlu0 %v462_v52 }
  0xab   :  { %478 = vadd.xlane.f32.xlu1 %v477_v59 }
  0xac   :  { %466 = vadd.xlane.f32.xlu0 %v465_v60 }
  0xaf   :  { %617 = vadd.xlane.f32.xlu1 %v616_v0 }
  0xb0   :  { %614 = vadd.xlane.f32.xlu0 %v613_v1 }
  0xb3   :  { %629 = vadd.xlane.f32.xlu1 %v628_v4  ;;  %v639_v4 = vld [vmem:[#allocation11 + $0x68] sm:$0xff] }
  0xb4   :  { %626 = vadd.xlane.f32.xlu0 %v625_v5 }
  0xb7   :  { %632 = vadd.xlane.f32.xlu1 %v631_v8 }
  0xb8   :  { %620 = vadd.xlane.f32.xlu0 %v619_v9 }
  0xbb   :  { %635 = vadd.xlane.f32.xlu1 %v634_v12 }
  0xbc   :  { %623 = vadd.xlane.f32.xlu0 %v622_v13  ;;  %v980_v13 = vpack.c.bf16 %v639_v4, %v638_v3 }
 0x10c   :  { %v185_v14 = vpop.xlane.xlu1 %184 }
 0x10d   :  { %v173_v15 = vpop.xlane.xlu0 %172  ;;  %v238_v38 = vrot.slane %v185_v14, %v1412_v30 }
 0x10e   :  { %v213_v39 = vrot.slane %v173_v15, %v1412_v30 }
 0x110   :  { %v188_v17 = vpop.xlane.xlu1 %187 }
 0x111   :  { %v176_v18 = vpop.xlane.xlu0 %175  ;;  %v242_v33 = vrot.slane %v188_v17, %v1408_v27  ;;  %v641_v17 = vld [vmem:[#allocation11 + $0x78] sm:$0xff] }
 0x112   :  { %v218_v34 = vrot.slane %v176_v18, %v1408_v27 }
 0x113   :  { %v243_v45 = vsel %vm219_vm2, %v242_v33, %v238_v38 }
 0x114   :  { %v191_v20 = vpop.xlane.xlu1 %190  ;;  %v220_v46 = vsel %vm219_vm2, %v218_v34, %v213_v39 }
 0x115   :  { %v179_v21 = vpop.xlane.xlu0 %178  ;;  %v247_v36 = vrot.slane %v191_v20, %v1410_v29 }
 0x116   :  { %v225_v37 = vrot.slane %v179_v21, %v1410_v29  ;;  %v983_v21 = vpack.c.bf16 %v641_v17, %v640_v16 }
 0x117   :  { %v248_v49 = vsel %vm226_vm3, %v247_v36, %v243_v45 }
 0x118   :  { %v140_v25 = vpop.xlane.xlu1 %139  ;;  %v227_v50 = vsel %vm226_vm3, %v225_v37, %v220_v46 }
 0x119   :  { %v137_v26 = vpop.xlane.xlu0 %136  ;;  %v344_v60 = vrot.slane %v140_v25, %v1408_v27 }
 0x11a   :  { %v340_v61 = vrot.slane %v137_v26, %v1412_v30 }
 0x11c   :  { %v152_v31 = vpop.xlane.xlu1 %151  ;;  %v345_v7 = vsel %vm219_vm2, %v344_v60, %v340_v61 }
 0x11d   :  { %v149_v32 = vpop.xlane.xlu0 %148  ;;  %v363_v62 = vrot.slane %v152_v31, %v1408_v27 }
 0x11e   :  { %v359_v63 = vrot.slane %v149_v32, %v1412_v30 }
 0x120   :  { %v194_v43 = vpop.xlane.xlu1 %193  ;;  %v364_v8 = vsel %vm219_vm2, %v363_v62, %v359_v63 }
 0x121   :  { %v182_v44 = vpop.xlane.xlu0 %181  ;;  %v252_v47 = vrot.slane %v194_v43, %v1416_v35 }
 0x122   :  { %v232_v48 = vrot.slane %v182_v44, %v1416_v35 }
 0x123   :  { %v253_v52 = vsel %vm233_vm4, %v252_v47, %v248_v49 }
 0x124   :  { %v234_v54 = vsel %vm233_vm4, %v232_v48, %v227_v50  ;;  %v155_v57 = vpop.xlane.xlu1 %154 }
 0x125   :  { %v143_v58 = vpop.xlane.xlu0 %142  ;;  %v255_v59 = vsel %vm254_vm5, %v253_v52, %v234_v54  ;;  %v368_v0 = vrot.slane %v155_v57, %v1410_v29 }
 0x126   :  { %915 = vmatmul.mubr.msk.f32.vlgmr.msra.gmra.mrb[0].mxu0 %vm256_vm6, %v255_v59  ;;  %v349_v1 = vrot.slane %v143_v58, %v1410_v29 }
 0x127   :  { %975 = vmatpush3.bf16.msra.mxu0 %v974_v51  ;;  %936 = vmatprep.mubr.msk.f32.mxu0 %vm1200_vm1, %v1201_v53  ;;  %v369_v11 = vsel %vm226_vm3, %v368_v0, %v364_v8  ;;  %v774_v8 = vld [vmem:[#allocation12 + $0x18] sm:$0xff] }
 0x128   :  { %976 = vmatprep.subr.bf16.mxu0 %v1199_v41  ;;  %v158_v5 = vpop.xlane.xlu1 %157  ;;  %v350_v12 = vsel %vm226_vm3, %v349_v1, %v345_v7  ;;  %v773_v7 = vld [vmem:[#allocation12 + $0x10] sm:$0xff] }
 0x129   :  { %v146_v6 = vpop.xlane.xlu0 %145  ;;  %v373_v9 = vrot.slane %v158_v5, %v1416_v35  ;;  %v771_v5 = vld [vmem:[#allocation12] sm:$0xff] }
 0x12a   :  { %v354_v10 = vrot.slane %v146_v6, %v1416_v35  ;;  %v772_v6 = vld [vmem:[#allocation12 + $0x8] sm:$0xff] }
 0x12b   :  { %978 = vmatpush3.bf16.msra.mxu0 %v977_v2  ;;  %v374_v14 = vsel %vm233_vm4, %v373_v9, %v369_v11  ;;  %v989_v9 = vpack.c.bf16 %v774_v8, %v773_v7 }
 0x12c   :  { %v355_v15 = vsel %vm233_vm4, %v354_v10, %v350_v12  ;;  %985 = vmatprep.subr.bf16.mxu0 %v1199_v41  ;;  %v461_v18 = vpop.xlane.xlu1 %460 }
 0x12d   :  { %v458_v19 = vpop.xlane.xlu0 %457  ;;  %v375_v20 = vsel %vm254_vm5, %v374_v14, %v355_v15  ;;  %v500_v26 = vrot.slane %v461_v18, %v1408_v27 }
 0x12e   :  { %926 = vmatmul.mubr.msk.f32.vlgmr.msra.gmra.mrb[0].mxu1 %vm256_vm6, %v375_v20  ;;  %v496_v28 = vrot.slane %v458_v19, %v1412_v30 }
 0x12f   :  { %981 = vmatpush3.bf16.msra.mxu1 %v980_v13  ;;  %947 = vmatprep.mubr.msk.f32.mxu1 %vm1200_vm1, %v1201_v53 }
 0x130   :  { %982 = vmatprep.subr.bf16.mxu1 %v1199_v41  ;;  %v473_v22 = vpop.xlane.xlu1 %472  ;;  %v501_v38 = vsel %vm219_vm2, %v500_v26, %v496_v28 }
 0x131   :  { %v470_v23 = vpop.xlane.xlu0 %469  ;;  %v519_v31 = vrot.slane %v473_v22, %v1408_v27 }
 0x132   :  { %v515_v32 = vrot.slane %v470_v23, %v1412_v30 }
 0x133   :  { %984 = vmatpush3.bf16.msra.mxu1 %v983_v21 }
 0x134   :  { %v476_v24 = vpop.xlane.xlu1 %475  ;;  %v520_v39 = vsel %vm219_vm2, %v519_v31, %v515_v32 }
 0x135   :  { %v464_v25 = vpop.xlane.xlu0 %463  ;;  %v524_v33 = vrot.slane %v476_v24, %v1410_v29 }
 0x136   :  { %v505_v34 = vrot.slane %v464_v25, %v1410_v29 }
 0x137   :  { %v525_v43 = vsel %vm226_vm3, %v524_v33, %v520_v39 }
 0x138   :  { %v479_v36 = vpop.xlane.xlu1 %478  ;;  %v506_v44 = vsel %vm226_vm3, %v505_v34, %v501_v38 }
 0x139   :  { %v467_v37 = vpop.xlane.xlu0 %466  ;;  %v529_v40 = vrot.slane %v479_v36, %v1416_v35 }
 0x13a   :  { %v510_v42 = vrot.slane %v467_v37, %v1416_v35 }
 0x13b   :  { %v530_v45 = vsel %vm233_vm4, %v529_v40, %v525_v43 }
 0x13c   :  { %v511_v46 = vsel %vm233_vm4, %v510_v42, %v506_v44  ;;  %v618_v47 = vpop.xlane.xlu1 %617 }
 0x13d   :  { %v615_v48 = vpop.xlane.xlu0 %614  ;;  %v531_v49 = vsel %vm254_vm5, %v530_v45, %v511_v46  ;;  %v657_v55 = vrot.slane %v618_v47, %v1408_v27 }
 0x13e   :  { %937 = vmatmul.mubr.msk.f32.vlgmr.msra.gmra.mrb[2].mxu0 %vm256_vm6, %v531_v49  ;;  %v653_v56 = vrot.slane %v615_v48, %v1412_v30 }
 0x13f   :  { %958 = vmatprep.mubr.msk.f32.mxu0 %vm1200_vm1, %v1201_v53  ;;  %v762_v53 = vld [vmem:[#allocation2] sm:$0x3] }
 0x140   :  { %v630_v50 = vpop.xlane.xlu1 %629  ;;  %v658_v63 = vsel %vm219_vm2, %v657_v55, %v653_v56 }
 0x141   :  { %v627_v51 = vpop.xlane.xlu0 %626  ;;  %v676_v57 = vrot.slane %v630_v50, %v1408_v27 }
 0x142   :  { %v672_v58 = vrot.slane %v627_v51, %v1412_v30 }
 0x144   :  { %v633_v52 = vpop.xlane.xlu1 %632  ;;  %v677_v0 = vsel %vm219_vm2, %v676_v57, %v672_v58 }
 0x145   :  { %v621_v54 = vpop.xlane.xlu0 %620  ;;  %v681_v59 = vrot.slane %v633_v52, %v1410_v29 }
 0x146   :  { %v662_v60 = vrot.slane %v621_v54, %v1410_v29 }
 0x147   :  { %v682_v3 = vsel %vm226_vm3, %v681_v59, %v677_v0 }
 0x148   :  { %v636_v61 = vpop.xlane.xlu1 %635  ;;  %v663_v27 = vsel %vm226_vm3, %v662_v60, %v658_v63 }
 0x149   :  { %v624_v62 = vpop.xlane.xlu0 %623  ;;  %v686_v1 = vrot.slane %v636_v61, %v1416_v35 }
 0x14a   :  { %v667_v2 = vrot.slane %v624_v62, %v1416_v35  ;;  %v986_v35 = vpack.c.bf16 %v772_v6, %v771_v5 }
 0x14b   :  { %v687_v30 = vsel %vm233_vm4, %v686_v1, %v682_v3 }
 0x14c   :  { %v668_v4 = vsel %vm233_vm4, %v667_v2, %v663_v27  ;;  %987 = vmatpush3.bf16.msra.mxu0 %v986_v35 }
 0x14d   :  { %v688_v29 = vsel %vm254_vm5, %v687_v30, %v668_v4  ;;  %988 = vmatprep.subr.bf16.mxu0 %v1199_v41  ;;  %v879_v41 = vld [vmem:[#allocation14] ss:$0 sm:$0xff] }
 0x14e   :  { %948 = vmatmul.mubr.msk.f32.vlgmr.msra.gmra.mrb[2].mxu1 %vm256_vm6, %v688_v29 }
 0x150   :  { %990 = vmatpush3.bf16.msra.mxu0 %v989_v9 }
 0x1f9   :  { %v325_v10 = vpop.f32.mrb[0].mxu0 }
 0x1fa   :  { %v916_v11 = vpop.f32.mrb[1].mxu0 }
 0x201   :  { %v444_v12 = vpop.f32.mrb[0].mxu1 }
 0x202   :  { %v445_v13 = vadd.f32 %v444_v12, %v325_v10  ;;  %v927_v14 = vpop.f32.mrb[1].mxu1 }
 0x211   :  { %v600_v15 = vpop.f32.mrb[2].mxu0 }
 0x212   :  { %v604_v16 = vadd.f32 %v600_v15, %v445_v13  ;;  %v938_v17 = vpop.f32.mrb[3].mxu0 }
 0x221   :  { %v757_v18 = vpop.f32.mrb[2].mxu1 }
 0x222   :  { %v761_v19 = vadd.f32 %v757_v18, %v604_v16  ;;  %v949_v20 = vpop.f32.mrb[3].mxu1 }
 0x224   :  { %v763_v21 = vadd.f32 %v762_v53, %v761_v19 }
 0x226   :  { %765 = vst.msk [vmem:[#allocation2] sm:$0x3] %vm124_vm7, %v763_v21 }
 0x22d   :  { %v769_v22 = vld [vmem:[#allocation2] sm:$0x3] }
 0x22e   :  { %v770_v23 = vmul.f32 0.015625, %v769_v22 }
 0x230   :  { %959 = vmatmul.mubr.msk.f32.vlgmr.msra.gmra.mrb[4].mxu0 %vm256_vm6, %v770_v23 }
 0x303   :  { %v851_v24 = vpop.f32.mrb[4].mxu0 }
 0x304   :  { %v852_v25 = vadd.f32 %v879_v41, %v851_v24  ;;  %v960_v26 = vpop.f32.mrb[5].mxu0 }
 0x306   :  { %856 = vst.msk [vmem:[#allocation15] sm:$0x3] %vm855_vm8, %v852_v25 }
 0x307   :  { %1169 = shalt.err (!%p1166_p4)
}
 0x308   :  { %s1170_s30 = scalar_lea.hbm %s1513_s7, 32 }
 0x309   :  { %p1171_p5 = scmp.ne.s32.totalorder %s1513_s7, %s1170_s30  ;;  %p1174_p6 = scmp.lt.u32.totalorder %s1170_s30, %s1513_s7 }
 0x30b   :  { %p1176_p7 = pnand %p1174_p6, %p1171_p5 }
 0x30d   :  { %1179 = shalt.err (!%p1176_p7)
}
 0x30e   :  { %866 = dma.vmem_to_hbm [thread:$0]  %s864_s8, 32, %s1513_s7, [#allocation5]  }
 0x30f   :  { %1188 = dma.done.wait [#allocation5], 32  }
 0x310   :  { %1189 = vsyncadd [#allocation5], 4294967264 }
 0x311   :  { %870 = vsyncpa [#allocation4], 1 }
 0x312   :  { %871 = vsyncpa [#allocation7], 1 }
 0x313   :  { %872 = vsyncpa [#allocation10], 1 }
 0x314   :  { %873 = vsyncpa [#allocation13], 1 }
 0x315   :  { %874 = vsyncpa [#allocation5], 1 }

</bundles_post_ra>
